<compile_context>
chip_gen: v7x
topology: tpu7x:2x2x1
jax: 0.10.0
libtpu: 0.0.40
codegen_flags: <defaults>
</compile_context>

<pallas_src>
import functools

import jax
import jax.numpy as jnp
from jax.experimental import pallas as pl
from jax.experimental.pallas import tpu as pltpu

SUBLANE = 8  # f32 sublane count


def _round_up(x, m):
    return ((x + m - 1) // m) * m


# ----------------------------- kernels ------------------------------------- #

def _policy_kernel(x_ref, w1_ref, b1_ref, w2_ref, b2_ref, w3_ref, b3_ref,
                   out_ref):
    """action_space=None specialization: no scale/bias epilogue."""
    cd = w1_ref.dtype                      # compute dtype of the dots (f32 or bf16)
    x = x_ref[...].astype(cd)              # cast in VMEM, not on the host
    h = jnp.dot(x, w1_ref[...], preferred_element_type=jnp.float32)
    h = jnp.maximum(h + b1_ref[...], 0.0)                      # f32 epilogue
    h = jnp.dot(h.astype(cd), w2_ref[...], preferred_element_type=jnp.float32)
    h = jnp.maximum(h + b2_ref[...], 0.0)
    m = jnp.dot(h.astype(cd), w3_ref[...], preferred_element_type=jnp.float32)
    out_ref[...] = jnp.tanh(m + b3_ref[...])


def _policy_kernel_affine(x_ref, w1_ref, b1_ref, w2_ref, b2_ref, w3_ref, b3_ref,
                          scale_ref, abias_ref, out_ref):
    """General case: tanh(...) * action_scale + action_bias."""
    cd = w1_ref.dtype
    x = x_ref[...].astype(cd)
    h = jnp.dot(x, w1_ref[...], preferred_element_type=jnp.float32)
    h = jnp.maximum(h + b1_ref[...], 0.0)
    h = jnp.dot(h.astype(cd), w2_ref[...], preferred_element_type=jnp.float32)
    h = jnp.maximum(h + b2_ref[...], 0.0)
    m = jnp.dot(h.astype(cd), w3_ref[...], preferred_element_type=jnp.float32)
    out_ref[...] = jnp.tanh(m + b3_ref[...]) * scale_ref[...] + abias_ref[...]


# ----------------------------- param prep (hoisted) ------------------------- #

def prepare_params(params, compute_dtype=jnp.bfloat16):
    """One-time prep: cast weights to the MXU compute dtype, biases to f32 (1,out).

    Call once at init and reuse the result every forward (zero marginal cost).
    compute_dtype=jnp.bfloat16 halves weight DMA bytes; use jnp.float32 for exact
    parity with the f32 reference.
    """
    p = {
        "w1": jnp.asarray(params["w1"], compute_dtype),
        "b1": jnp.asarray(params["b1"], jnp.float32).reshape(1, -1),
        "w2": jnp.asarray(params["w2"], compute_dtype),
        "b2": jnp.asarray(params["b2"], jnp.float32).reshape(1, -1),
        "w3": jnp.asarray(params["w3"], compute_dtype),
        "b3": jnp.asarray(params["b3"], jnp.float32).reshape(1, -1),
    }
    if params.get("action_scale") is not None:
        p["action_scale"] = jnp.asarray(params["action_scale"], jnp.float32).reshape(1, -1)
        p["action_bias"] = jnp.asarray(params["action_bias"], jnp.float32).reshape(1, -1)
    return p


@functools.lru_cache(maxsize=1)
def _vmem_budget():
    """(footprint budget, vmem_limit_bytes) derived from the chip's real VMEM."""
    try:
        cap = int(pltpu.get_tpu_info().vmem_capacity_bytes)
    except Exception:
        cap = 64 << 20  # conservative fallback (v7x-sized); safe everywhere
    return int(cap * 0.70), int(cap * 0.85)


# ----------------------------- wrapper -------------------------------------- #

def deterministic_policy_forward(state, prepared, *, block_b=1024):
    """state: (B, num_inputs) float. prepared: output of prepare_params()."""
    B, num_inputs = state.shape
    H = prepared["w1"].shape[1]
    A = prepared["w3"].shape[1]
    wsize = jnp.dtype(prepared["w1"].dtype).itemsize
    has_affine = "action_scale" in prepared

    budget, vmem_limit = _vmem_budget()

    # Batch tile: multiple of the f32 sublane count.  Cap so there are >= 2 grid
    # steps when B allows it (lets the "parallel" axis shard across 2 TCs on v7x).
    tb = min(block_b, _round_up(B, SUBLANE))
    if B >= 2 * SUBLANE:
        tb = min(tb, _round_up(pl.cdiv(B, 2), SUBLANE))
    tb = max(tb, SUBLANE)

    def _vmem_bytes(t):
        wts = 2 * (num_inputs * H + H * H + H * A) * wsize   # 2x: Pallas dbl-buffers
        biases = 2 * (2 * H + A) * 4
        acts = 2 * t * (num_inputs + A) * 4                  # dbl-buffered in/out tiles
        interm = 3 * t * H * 4                               # hidden activations + casts
        return wts + biases + acts + interm

    while tb > SUBLANE and _vmem_bytes(tb) > budget:
        tb = max(SUBLANE, _round_up(tb // 2, SUBLANE))

    Bp = _round_up(B, tb)
    grid = (Bp // tb,)

    x = state.astype(jnp.float32)
    if Bp != B:
        # Only the ragged batch tail is padded (exact: extra rows sliced off below).
        x = jnp.pad(x, ((0, Bp - B), (0, 0)))

    def resident(shape):  # weights/biases: same block every grid step (VMEM-resident)
        return pl.BlockSpec(shape, lambda i: (0, 0))

    in_specs = [
        pl.BlockSpec((tb, num_inputs), lambda i: (i, 0)),   # state: tiled over batch
        resident((num_inputs, H)), resident((1, H)),
        resident((H, H)), resident((1, H)),
        resident((H, A)), resident((1, A)),
    ]
    inputs = [x, prepared["w1"], prepared["b1"], prepared["w2"], prepared["b2"],
              prepared["w3"], prepared["b3"]]
    kernel = _policy_kernel

    if has_affine:
        in_specs += [resident((1, A)), resident((1, A))]
        inputs += [prepared["action_scale"], prepared["action_bias"]]
        kernel = _policy_kernel_affine

    flops = 2 * Bp * (num_inputs * H + H * H + H * A)
    bytes_accessed = (4 * Bp * (num_inputs + A)
                      + wsize * (num_inputs * H + H * H + H * A)
                      + 4 * (2 * H + A))

    out = pl.pallas_call(
        kernel,
        out_shape=jax.ShapeDtypeStruct((Bp, A), jnp.float32),
        grid=grid,
        in_specs=in_specs,
        out_specs=pl.BlockSpec((tb, A), lambda i: (i, 0)),
        compiler_params=pltpu.CompilerParams(
            dimension_semantics=("parallel",),   # shard batch tiles across TCs (v7x)
            vmem_limit_bytes=vmem_limit,
        ),
        cost_estimate=pl.CostEstimate(
            flops=int(flops),
            transcendentals=int(Bp * A),
            bytes_accessed=int(bytes_accessed),
        ),
    )(*inputs)

    return out[:B] if Bp != B else out


# ----------------------------- params / reference --------------------------- #

def _xavier_uniform(key, fan_in, fan_out, gain=1.0):
    # Matches torch.nn.init.xavier_uniform_ (gain=1); the bound is symmetric in
    # fan_in/fan_out so (in, out) transposed storage uses the same bound.
    bound = gain * jnp.sqrt(6.0 / (fan_in + fan_out))
    return jax.random.uniform(key, (fan_in, fan_out), jnp.float32, -bound, bound)


def init_params(key, num_inputs, num_actions, hidden_dim):
    k1, k2, k3 = jax.random.split(key, 3)
    # action_space is None -> no action_scale/action_bias entries (elided kernel).
    return {
        "w1": _xavier_uniform(k1, num_inputs, hidden_dim),
        "b1": jnp.zeros((1, hidden_dim), jnp.float32),
        "w2": _xavier_uniform(k2, hidden_dim, hidden_dim),
        "b2": jnp.zeros((1, hidden_dim), jnp.float32),
        "w3": _xavier_uniform(k3, hidden_dim, num_actions),
        "b3": jnp.zeros((1, num_actions), jnp.float32),
    }


def reference_forward(state, p):
    h = jnp.maximum(state @ p["w1"] + p["b1"].reshape(1, -1), 0.0)
    h = jnp.maximum(h @ p["w2"] + p["b2"].reshape(1, -1), 0.0)
    mean = jnp.tanh(h @ p["w3"] + p["b3"].reshape(1, -1))
    if p.get("action_scale") is not None:
        mean = mean * jnp.asarray(p["action_scale"]).reshape(1, -1) \
               + jnp.asarray(p["action_bias"]).reshape(1, -1)
    return mean


# TODO(synk): the stochastic sample() path (normal noise + clamp) is host/JAX-side
# RL plumbing, not part of the forward kernel; use jax.random on top of this output.

if __name__ == "__main__":
    key = jax.random.PRNGKey(0)
    k_param, k_state, k_state2 = jax.random.split(key, 3)

    batch, num_inputs, num_actions, hidden_dim = 4, 16, 8, 32
    params = init_params(k_param, num_inputs, num_actions, hidden_dim)
    state = jax.random.normal(k_state, (batch, num_inputs), jnp.float32)
    ref = reference_forward(state, params)

    # 1) f32 compute path: tight parity with the PyTorch-equivalent reference.
    prepared_f32 = prepare_params(params, compute_dtype=jnp.float32)
    mean_f32 = jax.block_until_ready(deterministic_policy_forward(state, prepared_f32))
    assert mean_f32.shape == (batch, num_actions)
    assert jnp.allclose(mean_f32, ref, atol=1e-5, rtol=1e-5)

    # 2) bf16 weight/dot path (default for v5e/v6e/v7x): halves streaming DMA bytes.
    prepared_bf16 = prepare_params(params, compute_dtype=jnp.bfloat16)
    mean_bf16 = jax.block_until_ready(deterministic_policy_forward(state, prepared_bf16))
    assert mean_bf16.shape == (batch, num_actions)
    assert jnp.allclose(mean_bf16, ref, atol=3e-2, rtol=3e-2)

    # 3) Multi-tile grid (>= 2 batch tiles) + ragged batch tail padding.
    state2 = jax.random.normal(k_state2, (20, num_inputs), jnp.float32)
    mean2 = jax.block_until_ready(deterministic_policy_forward(state2, prepared_f32))
    ref2 = reference_forward(state2, params)
    assert mean2.shape == (20, num_actions)
    assert jnp.allclose(mean2, ref2, atol=1e-5, rtol=1e-5)

    # 4) action_space-style affine epilogue.
    params_aff = dict(params,
                      action_scale=jnp.full((num_actions,), 2.0, jnp.float32),
                      action_bias=jnp.full((num_actions,), 0.5, jnp.float32))
    prepared_aff = prepare_params(params_aff, compute_dtype=jnp.float32)
    mean_aff = jax.block_until_ready(deterministic_policy_forward(state, prepared_aff))
    ref_aff = reference_forward(state, params_aff)
    assert jnp.allclose(mean_aff, ref_aff, atol=1e-5, rtol=1e-5)

    print("KERNEL_OK")
</pallas_src>

<mosaic_0001>
module attributes {stable_mosaic.version = 11 : i64} {
  func.func @_policy_kernel(%arg0: i32, %arg1: memref<8x16xf32, #tpu.memory_space<vmem>>, %arg2: memref<16x32xf32, #tpu.memory_space<vmem>>, %arg3: memref<1x32xf32, #tpu.memory_space<vmem>>, %arg4: memref<32x32xf32, #tpu.memory_space<vmem>>, %arg5: memref<1x32xf32, #tpu.memory_space<vmem>>, %arg6: memref<32x8xf32, #tpu.memory_space<vmem>>, %arg7: memref<1x8xf32, #tpu.memory_space<vmem>>, %arg8: memref<8x8xf32, #tpu.memory_space<vmem>>) attributes {dimension_semantics = [#tpu.dimension_semantics<parallel>], iteration_bounds = array<i64: 1>, scalar_prefetch = 0 : i64, scratch_operands = 0 : i64, tpu.core_type = #tpu.core_type<tc>, window_params = [{transform_indices = @transform_0, window_bounds = array<i64: 8, 16>}, {pipeline_mode = #tpu.pipeline_mode<synchronous>, transform_indices = @transform_1, window_bounds = array<i64: 16, 32>}, {pipeline_mode = #tpu.pipeline_mode<synchronous>, transform_indices = @transform_2, window_bounds = array<i64: 1, 32>}, {pipeline_mode = #tpu.pipeline_mode<synchronous>, transform_indices = @transform_3, window_bounds = array<i64: 32, 32>}, {pipeline_mode = #tpu.pipeline_mode<synchronous>, transform_indices = @transform_4, window_bounds = array<i64: 1, 32>}, {pipeline_mode = #tpu.pipeline_mode<synchronous>, transform_indices = @transform_5, window_bounds = array<i64: 32, 8>}, {pipeline_mode = #tpu.pipeline_mode<synchronous>, transform_indices = @transform_6, window_bounds = array<i64: 1, 8>}, {transform_indices = @transform_7, window_bounds = array<i64: 8, 8>}]} {
    %c0 = arith.constant 0 : index
    %c0_0 = arith.constant 0 : index
    %0 = vector.load %arg1[%c0, %c0_0] : memref<8x16xf32, #tpu.memory_space<vmem>>, vector<8x16xf32>
    %c0_1 = arith.constant 0 : index
    %c0_2 = arith.constant 0 : index
    %1 = vector.load %arg2[%c0_1, %c0_2] : memref<16x32xf32, #tpu.memory_space<vmem>>, vector<16x32xf32>
    %cst = arith.constant dense<0.000000e+00> : vector<8x32xf32>
    %2 = tpu.matmul %0, %1, %cst {dimension_numbers = #tpu.dot_dimension_numbers<[1], [0], [0], [1], [0, 0, 1, 1], [], []>} : vector<8x16xf32>, vector<16x32xf32>, vector<8x32xf32> -> vector<8x32xf32>
    %c0_3 = arith.constant 0 : index
    %c0_4 = arith.constant 0 : index
    %3 = vector.load %arg3[%c0_3, %c0_4] : memref<1x32xf32, #tpu.memory_space<vmem>>, vector<1x32xf32>
    %4 = vector.broadcast %3 : vector<1x32xf32> to vector<8x32xf32>
    %5 = arith.addf %2, %4 : vector<8x32xf32>
    %cst_5 = arith.constant 0.000000e+00 : f32
    %6 = vector.broadcast %cst_5 : f32 to vector<8x32xf32>
    %7 = arith.maximumf %5, %6 : vector<8x32xf32>
    %c0_6 = arith.constant 0 : index
    %c0_7 = arith.constant 0 : index
    %8 = vector.load %arg4[%c0_6, %c0_7] : memref<32x32xf32, #tpu.memory_space<vmem>>, vector<32x32xf32>
    %cst_8 = arith.constant dense<0.000000e+00> : vector<8x32xf32>
    %9 = tpu.matmul %7, %8, %cst_8 {dimension_numbers = #tpu.dot_dimension_numbers<[1], [0], [0], [1], [0, 0, 1, 1], [], []>} : vector<8x32xf32>, vector<32x32xf32>, vector<8x32xf32> -> vector<8x32xf32>
    %c0_9 = arith.constant 0 : index
    %c0_10 = arith.constant 0 : index
    %10 = vector.load %arg5[%c0_9, %c0_10] : memref<1x32xf32, #tpu.memory_space<vmem>>, vector<1x32xf32>
    %11 = vector.broadcast %10 : vector<1x32xf32> to vector<8x32xf32>
    %12 = arith.addf %9, %11 : vector<8x32xf32>
    %cst_11 = arith.constant 0.000000e+00 : f32
    %13 = vector.broadcast %cst_11 : f32 to vector<8x32xf32>
    %14 = arith.maximumf %12, %13 : vector<8x32xf32>
    %c0_12 = arith.constant 0 : index
    %c0_13 = arith.constant 0 : index
    %15 = vector.load %arg6[%c0_12, %c0_13] : memref<32x8xf32, #tpu.memory_space<vmem>>, vector<32x8xf32>
    %cst_14 = arith.constant dense<0.000000e+00> : vector<8x8xf32>
    %16 = tpu.matmul %14, %15, %cst_14 {dimension_numbers = #tpu.dot_dimension_numbers<[1], [0], [0], [1], [0, 0, 1, 1], [], []>} : vector<8x32xf32>, vector<32x8xf32>, vector<8x8xf32> -> vector<8x8xf32>
    %c0_15 = arith.constant 0 : index
    %c0_16 = arith.constant 0 : index
    %17 = vector.load %arg7[%c0_15, %c0_16] : memref<1x8xf32, #tpu.memory_space<vmem>>, vector<1x8xf32>
    %18 = vector.broadcast %17 : vector<1x8xf32> to vector<8x8xf32>
    %19 = arith.addf %16, %18 : vector<8x8xf32>
    %20 = math.tanh %19 : vector<8x8xf32>
    %c0_17 = arith.constant 0 : index
    %c0_18 = arith.constant 0 : index
    %21 = vector.load %arg8[%c0_17, %c0_18] : memref<8x8xf32, #tpu.memory_space<vmem>>, vector<8x8xf32>
    tpu.vector_store %arg8[%c0_17, %c0_18], %20 {strides = array<i32>} : memref<8x8xf32, #tpu.memory_space<vmem>>, vector<8x8xf32>,
    return
  }
  func.func @transform_0(%arg0: i32) -> (i32, i32) {
    %c0_i32 = arith.constant 0 : i32
    %c0_i32_0 = arith.constant 0 : i32
    return %arg0, %c0_i32 : i32, i32
  }
  func.func @transform_1(%arg0: i32) -> (i32, i32) {
    %c0_i32 = arith.constant 0 : i32
    %c0_i32_0 = arith.constant 0 : i32
    %c0_i32_1 = arith.constant 0 : i32
    return %c0_i32, %c0_i32_0 : i32, i32
  }
  func.func @transform_2(%arg0: i32) -> (i32, i32) {
    %c0_i32 = arith.constant 0 : i32
    %c0_i32_0 = arith.constant 0 : i32
    %c0_i32_1 = arith.constant 0 : i32
    return %c0_i32, %c0_i32_0 : i32, i32
  }
  func.func @transform_3(%arg0: i32) -> (i32, i32) {
    %c0_i32 = arith.constant 0 : i32
    %c0_i32_0 = arith.constant 0 : i32
    %c0_i32_1 = arith.constant 0 : i32
    return %c0_i32, %c0_i32_0 : i32, i32
  }
  func.func @transform_4(%arg0: i32) -> (i32, i32) {
    %c0_i32 = arith.constant 0 : i32
    %c0_i32_0 = arith.constant 0 : i32
    %c0_i32_1 = arith.constant 0 : i32
    return %c0_i32, %c0_i32_0 : i32, i32
  }
  func.func @transform_5(%arg0: i32) -> (i32, i32) {
    %c0_i32 = arith.constant 0 : i32
    %c0_i32_0 = arith.constant 0 : i32
    %c0_i32_1 = arith.constant 0 : i32
    return %c0_i32, %c0_i32_0 : i32, i32
  }
  func.func @transform_6(%arg0: i32) -> (i32, i32) {
    %c0_i32 = arith.constant 0 : i32
    %c0_i32_0 = arith.constant 0 : i32
    %c0_i32_1 = arith.constant 0 : i32
    return %c0_i32, %c0_i32_0 : i32, i32
  }
  func.func @transform_7(%arg0: i32) -> (i32, i32) {
    %c0_i32 = arith.constant 0 : i32
    %c0_i32_0 = arith.constant 0 : i32
    return %arg0, %c0_i32 : i32, i32
  }
}

</mosaic_0001>

<bundles_post_ra>
// kernel: tpu_custom_call.1
= control target key start
LH: loop header
LB: loop body
LE: loop exit
PB: predicated region body
PF: predicated region fallthrough
CT: control target
= control target key end

     0   :  { %12 = vsyncpa [#allocation3], 0  ;;  %s541_s0 = inlined_call_operand.hbm [shape: f32[8,16], index: 0, kind: input, shape index: {}]   ;;  %s542_s1 = inlined_call_operand.vmem [shape: f32[16,32], index: 1, kind: input, shape index: {}]   ;;  %s543_s2 = inlined_call_operand.vmem [shape: f32[1,32], index: 2, kind: input, shape index: {}]   ;;  %s544_s3 = inlined_call_operand.vmem [shape: f32[32,32], index: 3, kind: input, shape index: {}]   ;;  %s545_s4 = inlined_call_operand.vmem [shape: f32[1,32], index: 4, kind: input, shape index: {}]   ;;  %s546_s5 = inlined_call_operand.vmem [shape: f32[32,8], index: 5, kind: input, shape index: {}]   ;;  %s547_s6 = inlined_call_operand.vmem [shape: f32[1,8], index: 6, kind: input, shape index: {}]   ;;  %s548_s7 = inlined_call_operand.hbm [shape: f32[8,8], index: 7, kind: output, shape index: {}]  }
   0x1   :  { %13 = vsyncpa [#allocation4], 0  ;;  %s430_s24 = smov [#allocation2]   ;;  %s382_s28 = scalar_lea.hbm %s541_s0, 128 }
   0x2   :  { %s20_s25 = sshll.u32 %s430_s24, 4  ;;  %p383_p0 = scmp.ne.s32.totalorder %s541_s0, %s382_s28  ;;  %s21_s25 = int_to_ptr.vmem [resolvable:$true] %s20_s25 }
   0x3   :  { %p386_p1 = scmp.lt.u32.totalorder %s382_s28, %s541_s0 }
   0x5   :  { %p388_p2 = pnand %p386_p1, %p383_p0 }
   0x7   :  { %391 = shalt.err (!%p388_p2)
}
   0x8   :  { %s392_s10 = scalar_lea.vmem %s21_s25, 128  ;;  %p397_p4 = scmp.lt.s32.totalorder %s21_s25, %s21_s25 }
   0x9   :  { %p393_p3 = scmp.ne.s32.totalorder %s21_s25, %s392_s10  ;;  %p398_p5 = scmp.lt.s32.totalorder %s392_s10, %s392_s10 }
   0xb   :  { %p399_p6 = por %p398_p5, %p397_p4 }
   0xd   :  { %p400_p7 = pnand %p399_p6, %p393_p3 }
   0xf   :  { %403 = shalt.err (!%p400_p7)
}
  0x10   :  { %23 = dma.hbm_to_vmem [thread:$0]  %s541_s0, 128, %s21_s25, [#allocation3]  }
  0x11   :  { %426 = dma.done.wait [#allocation3], 128  }
  0x12   :  { %427 = vsyncadd [#allocation3], 4294967168  ;;  %v431_v0 = vmov 0.0|0.0   ;;  %vm432_vm0 = vmmov 0   ;;  %v433_v1 = vmov 0.0   ;;  %v40_v2 = vld [vmem:[%s542_s1] sm:$0xff] }
  0x13   :  { %360 = vmatprep.subr.bf16.mxu0 %v431_v0  ;;  %335 = vmatprep.mubr.msk.f32.mxu0 %vm432_vm0, %v433_v1  ;;  %v41_v3 = vld [vmem:[%s542_s1 + $0x8] sm:$0xff]  ;;  %v124_v5 = vld [vmem:[%s544_s3] sm:$0xff]  ;;  %vm49_vm1 = vcmask 130048   ;;  %v126_v9 = vld [vmem:[%s544_s3 + $0x10] sm:$0xff]  ;;  %vm135_vm2 = vcmask 261120   ;;  %vm295_vm3 = vcmask 64512  }
  0x14   :  { %363 = vmatprep.subr.bf16.mxu1 %v431_v0  ;;  %346 = vmatprep.mubr.msk.f32.mxu1 %vm432_vm0, %v433_v1  ;;  %v361_v4 = vpack.c.bf16 %v41_v3, %v40_v2  ;;  %v125_v6 = vld [vmem:[%s544_s3 + $0x8] sm:$0xff]  ;;  %v39_v8 = vld [vmem:[#allocation2] sm:$0xff]  ;;  %v127_v10 = vld [vmem:[%s544_s3 + $0x18] sm:$0xff] }
  0x15   :  { %v364_v7 = vpack.c.bf16 %v125_v6, %v124_v5  ;;  %v367_v11 = vpack.c.bf16 %v127_v10, %v126_v9  ;;  %v210_v12 = vld [vmem:[%s546_s5] sm:$0xff]  ;;  %v211_v13 = vld [vmem:[%s546_s5 + $0x8] sm:$0xff]  ;;  %v212_v20 = vld [vmem:[%s546_s5 + $0x10] sm:$0xff] }
  0x16   :  { %362 = vmatpush3.bf16.msra.mxu0 %v361_v4  ;;  %v370_v14 = vpack.c.bf16 %v211_v13, %v210_v12  ;;  %v312_v15 = vld [vmem:[%s543_s2] ss:$0 sm:$0xff]  ;;  %v213_v21 = vld [vmem:[%s546_s5 + $0x18] sm:$0xff]  ;;  %s434_s5 = smov [#allocation5]  }
  0x17   :  { %365 = vmatpush3.bf16.msra.mxu1 %v364_v7  ;;  %369 = vmatprep.subr.bf16.mxu0 %v431_v0  ;;  %v373_v22 = vpack.c.bf16 %v213_v21, %v212_v20  ;;  %v314_v23 = vld [vmem:[%s545_s4] ss:$0 sm:$0xff]  ;;  %s303_s12 = sshll.u32 %s434_s5, 4  ;;  %s304_s12 = int_to_ptr.vmem [resolvable:$true] %s303_s12 }
  0x18   :  { %366 = vmatprep.subr.bf16.mxu1 %v431_v0  ;;  %v316_v28 = vld [vmem:[%s547_s6] ss:$0 sm:$0xff]  ;;  %s404_s4 = scalar_lea.vmem %s304_s12, 128  ;;  %p409_p9 = scmp.lt.s32.totalorder %s304_s12, %s304_s12 }
  0x19   :  { %336 = vmatmul.mubr.msk.f32.vlgmr.msra.gmra.mrb[0].mxu0 %vm49_vm1, %v39_v8  ;;  %p405_p8 = scmp.ne.s32.totalorder %s304_s12, %s404_s4  ;;  %p410_p10 = scmp.lt.s32.totalorder %s404_s4, %s404_s4 }
  0x1a   :  { %357 = vmatprep.mubr.msk.f32.mxu0 %vm432_vm0, %v433_v1  ;;  %371 = vmatpush3.bf16.msra.mxu0 %v370_v14 }
  0x1b   :  { %368 = vmatpush3.bf16.msra.mxu1 %v367_v11  ;;  %372 = vmatprep.subr.bf16.mxu0 %v431_v0  ;;  %p411_p11 = por %p410_p10, %p409_p9 }
  0x1d   :  { %p412_p12 = pnand %p411_p11, %p405_p8 }
  0x1e   :  { %374 = vmatpush3.bf16.msra.mxu0 %v373_v22 }
  0xec   :  { %v119_v16 = vpop.f32.mrb[0].mxu0 }
  0xed   :  { %v120_v17 = vadd.f32 %v312_v15, %v119_v16  ;;  %v337_v18 = vpop.f32.mrb[1].mxu0 }
  0xef   :  { %v123_v19 = vmax.f32 %v120_v17, 0.0 }
  0xf1   :  { %347 = vmatmul.mubr.msk.f32.vlgmr.msra.gmra.mrb[0].mxu1 %vm135_vm2, %v123_v19 }
 0x1c4   :  { %v205_v24 = vpop.f32.mrb[0].mxu1 }
 0x1c5   :  { %v206_v25 = vadd.f32 %v314_v23, %v205_v24  ;;  %v348_v26 = vpop.f32.mrb[1].mxu1 }
 0x1c7   :  { %v209_v27 = vmax.f32 %v206_v25, 0.0 }
 0x1c9   :  { %358 = vmatmul.mubr.msk.f32.vlgmr.msra.gmra.mrb[2].mxu0 %vm135_vm2, %v209_v27 }
 0x29c   :  { %v290_v29 = vpop.f32.mrb[2].mxu0 }
 0x29d   :  { %v291_v30 = vadd.f32 %v316_v28, %v290_v29  ;;  %v359_v31 = vpop.f32.mrb[3].mxu0 }
 0x29f   :  { %380 = vtanh.f32 %v291_v30 }
 0x2a9   :  { %v381_v32 = vpop.eup %380 }
 0x2aa   :  { %296 = vst.msk [vmem:[#allocation5] sm:$0xff] %vm295_vm3, %v381_v32 }
 0x2ab   :  { %415 = shalt.err (!%p412_p12)
}
 0x2ac   :  { %s416_s6 = scalar_lea.hbm %s548_s7, 128 }
 0x2ad   :  { %p417_p13 = scmp.ne.s32.totalorder %s548_s7, %s416_s6  ;;  %p420_p0 = scmp.lt.u32.totalorder %s416_s6, %s548_s7 }
 0x2af   :  { %p422_p1 = pnand %p420_p0, %p417_p13 }
 0x2b1   :  { %425 = shalt.err (!%p422_p1)
}
 0x2b2   :  { %306 = dma.vmem_to_hbm [thread:$0]  %s304_s12, 128, %s548_s7, [#allocation4]  }
 0x2b3   :  { %428 = dma.done.wait [#allocation4], 128  }
 0x2b4   :  { %429 = vsyncadd [#allocation4], 4294967168 }
 0x2b5   :  { %310 = vsyncpa [#allocation3], 1 }
 0x2b6   :  { %311 = vsyncpa [#allocation4], 1 }

</bundles_post_ra>
